<compile_context>
chip_gen: v7x
topology: tpu7x:2x2x1
jax: 0.10.0
libtpu: 0.0.40
codegen_flags: <defaults>
</compile_context>

<pallas_src>
import functools

import jax
import jax.numpy as jnp
from jax import lax
from jax.experimental import pallas as pl
from jax.experimental.pallas import tpu as pltpu


# ----------------------------- Pallas kernels -----------------------------

def _matmul_kernel(a_ref, w_ref, o_ref):
    # a: [TM, K], w: [K, N] (resident across the grid) -> o: [TM, N]
    o_ref[...] = jnp.dot(a_ref[...], w_ref[...],
                         preferred_element_type=jnp.float32).astype(o_ref.dtype)


def _bilinear_kernel(x_ref, v_ref, o_ref):
    # x: [1, TX, Ix], v: [1, Sy*O, Ix] (resident per batch) -> o: [1, TX, Sy*O]
    # Contract the last dims directly (A @ B^T form) — no explicit transpose.
    out = lax.dot_general(
        x_ref[0], v_ref[0],
        dimension_numbers=(((1,), (1,)), ((), ())),
        preferred_element_type=jnp.float32)
    o_ref[0] = out.astype(o_ref.dtype)


# ------------------------------- wrappers ----------------------------------

def _row_tile(n, max_tile=512):
    """Largest row tile <= max_tile that divides n (multiples of 8), else full."""
    for t in (512, 256, 128, 64, 32, 16, 8):
        if t <= max_tile and t <= n and n % t == 0:
            return t
    return n  # full dim (always a legal block extent)


def _matmul_rows(a, w):
    """Row-tiled a @ w with the weight panel resident across the grid."""
    M, K = a.shape
    N = w.shape[1]
    tm = _row_tile(M)
    cost = pl.CostEstimate(flops=2 * M * K * N, transcendentals=0,
                           bytes_accessed=4 * (M * K + K * N + M * N))
    return pl.pallas_call(
        _matmul_kernel,
        out_shape=jax.ShapeDtypeStruct((M, N), a.dtype),
        grid=(M // tm,),
        in_specs=[pl.BlockSpec((tm, K), lambda i: (i, 0)),
                  pl.BlockSpec((K, N), lambda i: (0, 0))],
        out_specs=pl.BlockSpec((tm, N), lambda i: (i, 0)),
        compiler_params=pltpu.CompilerParams(
            dimension_semantics=("parallel",)),
        cost_estimate=cost,
    )(a, w)


def _bilinear(x_aug, v):
    """out[b, x, (y,o)] = sum_i x_aug[b,x,i] * v[b,(y,o),i]  (lane-dense out)."""
    B, Sx, Ix = x_aug.shape
    _, N, _ = v.shape                      # N = Sy * O
    tx = _row_tile(Sx)
    cost = pl.CostEstimate(flops=2 * B * Sx * Ix * N, transcendentals=0,
                           bytes_accessed=4 * (B * Sx * Ix + B * N * Ix + B * Sx * N))
    return pl.pallas_call(
        _bilinear_kernel,
        out_shape=jax.ShapeDtypeStruct((B, Sx, N), x_aug.dtype),
        grid=(B, Sx // tx),
        in_specs=[pl.BlockSpec((1, tx, Ix), lambda b, t: (b, t, 0)),
                  pl.BlockSpec((1, N, Ix), lambda b, t: (b, 0, 0))],   # re-DMAd only when b changes
        out_specs=pl.BlockSpec((1, tx, N), lambda b, t: (b, t, 0)),
        compiler_params=pltpu.CompilerParams(
            dimension_semantics=("parallel", "parallel")),
        cost_estimate=cost,
    )(x_aug, v)


# ------------------------------- module ------------------------------------

class BiaffinePallas:
    def __init__(self, in_size, out_size, bias_x=True, bias_y=True, *, key):
        self.in_size = in_size
        self.out_size = out_size
        self.bias_x = bias_x
        self.bias_y = bias_y
        ix = in_size + int(bias_x)
        iy = in_size + int(bias_y)
        # torch.randn-equivalent parameter, same shape as the PyTorch module.
        self.U = jax.random.normal(key, (ix, out_size, iy), jnp.float32)
        # One-time parameter prep (not per forward): W_y[j, o*Ix + i] = U[i, o, j]
        self.W_y = jnp.transpose(self.U, (2, 1, 0)).reshape(iy, out_size * ix)

    def __call__(self, x, y):
        B, Sx, _ = x.shape
        _, Sy, _ = y.shape
        O = self.out_size
        Ix = self.in_size + int(self.bias_x)
        Iy = self.in_size + int(self.bias_y)

        if self.bias_x:
            x = jnp.concatenate([x, jnp.ones_like(x[..., :1])], axis=-1)  # [B,Sx,Ix]
        if self.bias_y:
            y = jnp.concatenate([y, jnp.ones_like(y[..., :1])], axis=-1)  # [B,Sy,Iy]

        # Stage 1: right contraction over j -> V2[(b,y),(o,i)]
        V2 = _matmul_rows(y.reshape(B * Sy, Iy), self.W_y)                # [B*Sy, O*Ix]
        # Free reshape (same linear order): [(b,y),(o,i)] -> [b, (y,o), i]
        V = V2.reshape(B, Sy * O, Ix)

        # Stage 2: left contraction over i -> [B, Sx, Sy*O] lane-dense slab
        out = _bilinear(x, V)

        # Free trailing-dim split to the reference layout.
        return out.reshape(B, Sx, Sy, O)


# ------------------------------- reference ---------------------------------

def biaffine_reference(x, y, U, bias_x=True, bias_y=True):
    if bias_x:
        x = jnp.concatenate([x, jnp.ones_like(x[..., :1])], axis=-1)
    if bias_y:
        y = jnp.concatenate([y, jnp.ones_like(y[..., :1])], axis=-1)
    return jnp.einsum('bxi,ioj,byj->bxyo', x, U, y,
                      precision=lax.Precision.HIGHEST)


# --------------------------------- main -------------------------------------

if __name__ == "__main__":
    key = jax.random.PRNGKey(0)
    k_u, k_x, k_y = jax.random.split(key, 3)

    B, Sx, Sy = 2, 8, 8
    in_size, out_size = 32, 4

    x = jax.random.normal(k_x, (B, Sx, in_size), jnp.float32)
    y = jax.random.normal(k_y, (B, Sy, in_size), jnp.float32)

    module = BiaffinePallas(in_size, out_size, bias_x=True, bias_y=True, key=k_u)

    out = module(x, y)
    out = jax.block_until_ready(out)

    ref = biaffine_reference(x, y, module.U, bias_x=True, bias_y=True)
    assert out.shape == (B, Sx, Sy, out_size)
    assert jnp.allclose(out, ref, atol=1e-2, rtol=1e-3), \
        float(jnp.max(jnp.abs(out - ref)))

    print("KERNEL_OK")
</pallas_src>

<mosaic_0001>
module attributes {stable_mosaic.version = 11 : i64} {
  func.func @_matmul_kernel(%arg0: i32, %arg1: memref<16x33xf32, #tpu.memory_space<vmem>>, %arg2: memref<33x132xf32, #tpu.memory_space<vmem>>, %arg3: memref<16x132xf32, #tpu.memory_space<vmem>>) attributes {dimension_semantics = [#tpu.dimension_semantics<parallel>], iteration_bounds = array<i64: 1>, scalar_prefetch = 0 : i64, scratch_operands = 0 : i64, tpu.core_type = #tpu.core_type<tc>, window_params = [{transform_indices = @transform_0, window_bounds = array<i64: 16, 33>}, {pipeline_mode = #tpu.pipeline_mode<synchronous>, transform_indices = @transform_1, window_bounds = array<i64: 33, 132>}, {transform_indices = @transform_2, window_bounds = array<i64: 16, 132>}]} {
    %c0 = arith.constant 0 : index
    %c0_0 = arith.constant 0 : index
    %0 = vector.load %arg1[%c0, %c0_0] : memref<16x33xf32, #tpu.memory_space<vmem>>, vector<16x33xf32>
    %c0_1 = arith.constant 0 : index
    %c0_2 = arith.constant 0 : index
    %1 = vector.load %arg2[%c0_1, %c0_2] : memref<33x132xf32, #tpu.memory_space<vmem>>, vector<33x132xf32>
    %cst = arith.constant dense<0.000000e+00> : vector<16x132xf32>
    %2 = tpu.matmul %0, %1, %cst {dimension_numbers = #tpu.dot_dimension_numbers<[1], [0], [0], [1], [0, 0, 1, 1], [], []>} : vector<16x33xf32>, vector<33x132xf32>, vector<16x132xf32> -> vector<16x132xf32>
    %c0_3 = arith.constant 0 : index
    %c0_4 = arith.constant 0 : index
    %3 = vector.load %arg3[%c0_3, %c0_4] : memref<16x132xf32, #tpu.memory_space<vmem>>, vector<16x132xf32>
    tpu.vector_store %arg3[%c0_3, %c0_4], %2 {strides = array<i32>} : memref<16x132xf32, #tpu.memory_space<vmem>>, vector<16x132xf32>,
    return
  }
  func.func @transform_0(%arg0: i32) -> (i32, i32) {
    %c0_i32 = arith.constant 0 : i32
    %c0_i32_0 = arith.constant 0 : i32
    return %arg0, %c0_i32 : i32, i32
  }
  func.func @transform_1(%arg0: i32) -> (i32, i32) {
    %c0_i32 = arith.constant 0 : i32
    %c0_i32_0 = arith.constant 0 : i32
    %c0_i32_1 = arith.constant 0 : i32
    return %c0_i32, %c0_i32_0 : i32, i32
  }
  func.func @transform_2(%arg0: i32) -> (i32, i32) {
    %c0_i32 = arith.constant 0 : i32
    %c0_i32_0 = arith.constant 0 : i32
    return %arg0, %c0_i32 : i32, i32
  }
}

</mosaic_0001>

<bundles_post_ra>
// kernel: tpu_custom_call.1
= control target key start
LH: loop header
LB: loop body
LE: loop exit
PB: predicated region body
PF: predicated region fallthrough
CT: control target
= control target key end

     0   :  { %7 = vsyncpa [#allocation3], 0  ;;  %s329_s0 = inlined_call_operand.hbm [shape: f32[16,33], index: 0, kind: input, shape index: {}]   ;;  %s330_s1 = inlined_call_operand.hbm [shape: f32[33,132], index: 1, kind: input, shape index: {}]   ;;  %s331_s2 = inlined_call_operand.hbm [shape: f32[16,132], index: 2, kind: output, shape index: {}]  }
   0x1   :  { %8 = vsyncpa [#allocation6], 0 }
   0x2   :  { %9 = vsyncpa [#allocation4], 0  ;;  %s264_s9 = smov [#allocation2]   ;;  %s192_s13 = scalar_lea.hbm %s329_s0, 256 }
   0x3   :  { %s15_s10 = sshll.u32 %s264_s9, 4  ;;  %p193_p0 = scmp.ne.s32.totalorder %s329_s0, %s192_s13  ;;  %s16_s10 = int_to_ptr.vmem [resolvable:$true] %s15_s10 }
   0x4   :  { %p196_p1 = scmp.lt.u32.totalorder %s192_s13, %s329_s0 }
   0x6   :  { %p198_p2 = pnand %p196_p1, %p193_p0 }
   0x8   :  { %201 = shalt.err (!%p198_p2)
}
   0x9   :  { %s202_s18 = scalar_lea.vmem %s16_s10, 256  ;;  %p207_p4 = scmp.lt.s32.totalorder %s16_s10, %s16_s10 }
   0xa   :  { %p203_p3 = scmp.ne.s32.totalorder %s16_s10, %s202_s18  ;;  %p208_p5 = scmp.lt.s32.totalorder %s202_s18, %s202_s18 }
   0xc   :  { %p209_p6 = por %p208_p5, %p207_p4 }
   0xe   :  { %p210_p7 = pnand %p209_p6, %p203_p3 }
  0x10   :  { %213 = shalt.err (!%p210_p7)
}
  0x11   :  { %s265_s19 = smov 128   ;;  %s266_s20 = smov 8  }
  0x12   :  { %21 = dma.hbm_to_vmem [thread:$0]  %s329_s0, 256, %s16_s10, [#allocation3], %s265_s19, %s265_s19, %s266_s20  }
  0x13   :  { %s267_s23 = smov [#allocation5]   ;;  %s214_s27 = scalar_lea.hbm %s330_s1, 1280 }
  0x14   :  { %s27_s24 = sshll.u32 %s267_s23, 4  ;;  %p215_p8 = scmp.ne.s32.totalorder %s330_s1, %s214_s27  ;;  %s28_s24 = int_to_ptr.vmem [resolvable:$true] %s27_s24 }
  0x15   :  { %p218_p9 = scmp.lt.u32.totalorder %s214_s27, %s330_s1 }
  0x17   :  { %p220_p10 = pnand %p218_p9, %p215_p8 }
  0x19   :  { %223 = shalt.err (!%p220_p10)
}
  0x1a   :  { %s224_s4 = scalar_lea.vmem %s28_s24, 1280  ;;  %p229_p12 = scmp.lt.s32.totalorder %s28_s24, %s28_s24 }
  0x1b   :  { %p225_p11 = scmp.ne.s32.totalorder %s28_s24, %s224_s4  ;;  %p230_p13 = scmp.lt.s32.totalorder %s224_s4, %s224_s4 }
  0x1d   :  { %p231_p0 = por %p230_p13, %p229_p12 }
  0x1f   :  { %p232_p1 = pnand %p231_p0, %p225_p11 }
  0x21   :  { %235 = shalt.err (!%p232_p1)
}
  0x22   :  { %s268_s0 = smov 256   ;;  %s269_s5 = smov 16  }
  0x23   :  { %33 = dma.hbm_to_vmem [thread:$0]  %s330_s1, 1280, %s28_s24, [#allocation6], %s268_s0, %s268_s0, %s269_s5  }
  0x24   :  { %258 = dma.done.wait [#allocation3], 256  }
  0x25   :  { %259 = vsyncadd [#allocation3], 4294967040 }
  0x26   :  { %260 = dma.done.wait [#allocation6], 1280  }
  0x27   :  { %261 = vsyncadd [#allocation6], 4294966016  ;;  %v270_v0 = vmov 0.0   ;;  %v43_v1 = vld [vmem:[#allocation5 + $0x8] sm:$0xff]  ;;  %v45_v2 = vld [vmem:[#allocation5 + $0x18] sm:$0xff]  ;;  %vm59_vm0 = vcmask 1040384  }
  0x28   :  { %130 = vmatprep.mubr.f32.mxu0 %v270_v0  ;;  %136 = vmatprep.mubr.f32.mxu1 %v270_v0  ;;  %v42_v3 = vld [vmem:[#allocation5] sm:$0xff]  ;;  %v170_v4 = vpack.c.bf16 %v45_v2, %v43_v1  ;;  %v44_v5 = vld [vmem:[#allocation5 + $0x10] sm:$0xff]  ;;  %v47_v6 = vld [vmem:[#allocation5 + $0x28] sm:$0xff]  ;;  %vm52_vm1 = vcmask 269312   ;;  %s271_s1 = smov [#allocation7]   ;;  %vm144_vm2 = vcmask 31744  }
  0x29   :  { %v49_v7 = vld [vmem:[#allocation5 + $0x38] sm:$0xff]  ;;  %v172_v8 = vpack.c.bf16 %v44_v5, %v42_v3  ;;  %v46_v10 = vld [vmem:[#allocation5 + $0x20] sm:$0xff]  ;;  %v48_v11 = vld [vmem:[#allocation5 + $0x30] sm:$0xff]  ;;  %s153_s8 = sshll.u32 %s271_s1, 4  ;;  %s154_s8 = int_to_ptr.vmem [resolvable:$true] %s153_s8 }
  0x2a   :  { %v174_v9 = vpack.c.bf16 %v49_v7, %v47_v6  ;;  %171 = vmatprep.subr.bf16.mxu0 %v170_v4  ;;  %178 = vmatprep.subr.bf16.mxu1 %v170_v4  ;;  %v176_v12 = vpack.c.bf16 %v48_v11, %v46_v10  ;;  %v51_v13 = vld [vmem:[#allocation5 + $0x48] sm:$0x1]  ;;  %v50_v14 = vld [vmem:[#allocation5 + $0x40] sm:$0x1]  ;;  %v40_v15 = vld [vmem:[#allocation2] sm:$0xff]  ;;  %s236_s9 = scalar_lea.vmem %s154_s8, 512  ;;  %p241_p3 = scmp.lt.s32.totalorder %s154_s8, %s154_s8 }
  0x2b   :  { %173 = vmatpush1.bf16.msra.mxu0 %v172_v8  ;;  %181 = vmatpush1.bf16.msra.mxu1 %v172_v8  ;;  %v41_v16 = vld [vmem:[#allocation2 + $0x8] sm:$0xff]  ;;  %p237_p2 = scmp.ne.s32.totalorder %s154_s8, %s236_s9  ;;  %p242_p4 = scmp.lt.s32.totalorder %s236_s9, %s236_s9 }
  0x2c   :  { %175 = vmatprep.subr.bf16.mxu0 %v174_v9  ;;  %179 = vmatprep.subr.bf16.mxu1 %v174_v9 }
  0x2d   :  { %p243_p5 = por %p242_p4, %p241_p3 }
  0x2f   :  { %177 = vmatpush1.bf16.msra.mxu0 %v176_v12  ;;  %182 = vmatpush1.bf16.msra.mxu1 %v176_v12  ;;  %p244_p6 = pnand %p243_p5, %p237_p2 }
  0x30   :  { %166 = vmatprep.subr.msk.mxu0 %vm59_vm0, %v51_v13  ;;  %180 = vmatprep.subr.msk.mxu1 %vm59_vm0, %v51_v13 }
  0x33   :  { %167 = vmatpush1.msk.msra.mxu0 %vm59_vm0, %v50_v14  ;;  %183 = vmatpush1.msk.msra.mxu1 %vm59_vm0, %v50_v14 }
  0x34   :  { %168 = vmatmul.mubr.msk.f32.vlgmr.msra.gmra.mrb[0].mxu0 %vm52_vm1, %v40_v15  ;;  %169 = vmatmul.mubr.msk.f32.vlgmr.msra.gmra.mrb[0].mxu1 %vm52_vm1, %v41_v16 }
 0x107   :  { %v132_v17 = vpop.f32.mrb[0].mxu0  ;;  %v138_v18 = vpop.f32.mrb[0].mxu1 }
 0x108   :  { %143 = vst [vmem:[#allocation7] sm:$0xff] %v132_v17  ;;  %146 = vst [vmem:[#allocation7 + $0x10] sm:$0xff] %v138_v18  ;;  %v134_v19 = vpop.f32.mrb[1].mxu0  ;;  %v140_v20 = vpop.f32.mrb[1].mxu1 }
 0x109   :  { %145 = vst.msk [vmem:[#allocation7 + $0x8] sm:$0xff] %vm144_vm2, %v134_v19  ;;  %147 = vst.msk [vmem:[#allocation7 + $0x18] sm:$0xff] %vm144_vm2, %v140_v20 }
 0x10a   :  { %247 = shalt.err (!%p244_p6)
}
 0x10b   :  { %s248_s12 = scalar_lea.hbm %s331_s2, 512 }
 0x10c   :  { %p249_p7 = scmp.ne.s32.totalorder %s331_s2, %s248_s12  ;;  %p252_p8 = scmp.lt.u32.totalorder %s248_s12, %s331_s2 }
 0x10e   :  { %p254_p9 = pnand %p252_p8, %p249_p7 }
 0x110   :  { %257 = shalt.err (!%p254_p9)
}
 0x111   :  { %159 = dma.vmem_to_hbm [thread:$0]  %s154_s8, 512, %s331_s2, [#allocation4], %s268_s0, %s268_s0, %s269_s5  }
 0x112   :  { %262 = dma.done.wait [#allocation4], 512  }
 0x113   :  { %263 = vsyncadd [#allocation4], 4294966784 }
 0x114   :  { %163 = vsyncpa [#allocation3], 1 }
 0x115   :  { %164 = vsyncpa [#allocation6], 1 }
 0x116   :  { %165 = vsyncpa [#allocation4], 1 }

</bundles_post_ra>
